<compile_context>
chip_gen: v5e
topology: v5e:2x2
jax: 0.10.0
libtpu: 0.0.40
codegen_flags: <defaults>
</compile_context>

<pallas_src>
import jax
import jax.numpy as jnp
from jax.experimental import pallas as pl
from jax.experimental.pallas import tpu as pltpu


# Raise v5e's 16 MiB default scoped-VMEM limit; 32 MiB is safe on all of
# v5e/v6e/v7x and comfortably holds the double-buffered 512-row conv tiles.
_VMEM_LIMIT_BYTES = 32 * 1024 * 1024


def _round_up(x, m):
    return ((x + m - 1) // m) * m


# ----------------------------------------------------------------------------
# Pallas kernels
# ----------------------------------------------------------------------------
def _conv_matmul_stats_kernel(a_ref, w_ref, o_ref, sum_ref, sq_ref):
    """One M-tile of im2col conv: (tm, K) @ (K, C_out), bf16 in / f32 accumulate,
    plus per-tile per-channel sum / sum-of-squares for train-mode BatchNorm."""
    acc = jnp.dot(a_ref[...], w_ref[...], preferred_element_type=jnp.float32)
    o_ref[...] = acc.astype(o_ref.dtype)
    sum_ref[0] = jnp.sum(acc, axis=0, keepdims=True)
    sq_ref[0] = jnp.sum(acc * acc, axis=0, keepdims=True)


def _bn_relu_kernel(x_ref, scale_ref, shift_ref, o_ref):
    x = x_ref[...].astype(jnp.float32)
    o_ref[...] = jnp.maximum(x * scale_ref[...] + shift_ref[...], 0.0).astype(o_ref.dtype)


def _matmul_bias_kernel(a_ref, w_ref, b_ref, o_ref):
    o_ref[...] = (jnp.dot(a_ref[...], w_ref[...], preferred_element_type=jnp.float32)
                  + b_ref[...]).astype(o_ref.dtype)


def _gru_recurrence_kernel(gx_ref, whh_ref, bhh_ref, o_ref, h_sc):
    """Whole GRU time loop in one kernel invocation.
    gx_ref: (T, B, 3H) f32 = W_ih x_t + b_ih (time-major), whh_ref: (H, 3H) f32."""
    T = gx_ref.shape[0]
    H = o_ref.shape[-1]
    h_sc[...] = jnp.zeros_like(h_sc)                   # PyTorch default h_0 = 0

    def step(t, carry):
        h = h_sc[...]                                  # (B, H) f32
        gh = jnp.dot(h, whh_ref[...],
                     preferred_element_type=jnp.float32) + bhh_ref[...]   # (B, 3H)
        gx = gx_ref[t]                                 # (B, 3H)
        # PyTorch gate order: [r, z, n]; b_hn stays inside the r*(...) term.
        r = jax.nn.sigmoid(gx[:, :H] + gh[:, :H])
        u = jax.nn.sigmoid(gx[:, H:2 * H] + gh[:, H:2 * H])
        n = jnp.tanh(gx[:, 2 * H:] + r * gh[:, 2 * H:])
        h_new = (1.0 - u) * n + u * h
        h_sc[...] = h_new
        o_ref[pl.ds(t, 1)] = h_new[None]
        return carry

    jax.lax.fori_loop(0, T, step, 0)


# ----------------------------------------------------------------------------
# Pallas wrappers (tiled over the row/M dimension)
# ----------------------------------------------------------------------------
def conv_matmul_stats(cols, wf, tm=512):
    """cols: (M, K) bf16, wf: (K, C) bf16 -> (out (M, C) bf16, sum (C,), sumsq (C,))."""
    M, K = cols.shape
    C = wf.shape[1]
    if M <= tm:
        tm = M
    Mp = _round_up(M, tm)
    if Mp != M:
        # zero rows contribute 0 to both sum and sum-of-squares -> stats stay exact
        cols = jnp.pad(cols, ((0, Mp - M), (0, 0)))
    grid_m = Mp // tm

    out, psum, psq = pl.pallas_call(
        _conv_matmul_stats_kernel,
        out_shape=(jax.ShapeDtypeStruct((Mp, C), jnp.bfloat16),
                   jax.ShapeDtypeStruct((grid_m, 1, C), jnp.float32),
                   jax.ShapeDtypeStruct((grid_m, 1, C), jnp.float32)),
        grid=(grid_m,),
        in_specs=[pl.BlockSpec((tm, K), lambda i: (i, 0)),
                  pl.BlockSpec((K, C), lambda i: (0, 0))],
        out_specs=(pl.BlockSpec((tm, C), lambda i: (i, 0)),
                   pl.BlockSpec((1, 1, C), lambda i: (i, 0, 0)),
                   pl.BlockSpec((1, 1, C), lambda i: (i, 0, 0))),
        compiler_params=pltpu.CompilerParams(
            dimension_semantics=("parallel",),
            vmem_limit_bytes=_VMEM_LIMIT_BYTES),
    )(cols, wf)

    if Mp != M:
        out = out[:M]
    return out, jnp.sum(psum, axis=(0, 1)), jnp.sum(psq, axis=(0, 1))


def bn_relu(x, scale, shift, out_dtype, tm=1024):
    """x: (M, C), scale/shift: (1, C) f32 -> relu(x*scale+shift) as out_dtype."""
    M, C = x.shape
    if M <= tm:
        tm = M
    Mp = _round_up(M, tm)
    if Mp != M:
        x = jnp.pad(x, ((0, Mp - M), (0, 0)))
    grid_m = Mp // tm

    y = pl.pallas_call(
        _bn_relu_kernel,
        out_shape=jax.ShapeDtypeStruct((Mp, C), out_dtype),
        grid=(grid_m,),
        in_specs=[pl.BlockSpec((tm, C), lambda i: (i, 0)),
                  pl.BlockSpec((1, C), lambda i: (0, 0)),
                  pl.BlockSpec((1, C), lambda i: (0, 0))],
        out_specs=pl.BlockSpec((tm, C), lambda i: (i, 0)),
        compiler_params=pltpu.CompilerParams(
            dimension_semantics=("parallel",),
            vmem_limit_bytes=_VMEM_LIMIT_BYTES),
    )(x, scale, shift)
    return y[:M] if Mp != M else y


def matmul_bias(a, w, b, tm=512):
    """a: (M, K) bf16, w: (K, N) bf16, b: (1, N) f32 -> (M, N) f32."""
    M, K = a.shape
    N = w.shape[1]
    if M <= tm:
        tm = M
    Mp = _round_up(M, tm)
    if Mp != M:
        a = jnp.pad(a, ((0, Mp - M), (0, 0)))
    grid_m = Mp // tm

    y = pl.pallas_call(
        _matmul_bias_kernel,
        out_shape=jax.ShapeDtypeStruct((Mp, N), jnp.float32),
        grid=(grid_m,),
        in_specs=[pl.BlockSpec((tm, K), lambda i: (i, 0)),
                  pl.BlockSpec((K, N), lambda i: (0, 0)),
                  pl.BlockSpec((1, N), lambda i: (0, 0))],
        out_specs=pl.BlockSpec((tm, N), lambda i: (i, 0)),
        compiler_params=pltpu.CompilerParams(
            dimension_semantics=("parallel",),
            vmem_limit_bytes=_VMEM_LIMIT_BYTES),
    )(a, w, b)
    return y[:M] if Mp != M else y


def gru_forward(z, w_ih_t, w_hh_t, b_ih, b_hh):
    """z: (B, T, D) f32 -> hidden sequence, time-major (T, B, H) f32. h_0 = 0."""
    B, T, D = z.shape
    H = w_hh_t.shape[0]
    # Input projection for ALL timesteps as one tiled MXU matmul (bias folded in),
    # computed time-major so the result reshapes to (T, B, 3H) with no transpose.
    zt = jnp.transpose(z, (1, 0, 2)).reshape(T * B, D).astype(jnp.bfloat16)
    gx = matmul_bias(zt, w_ih_t, b_ih.reshape(1, -1)).reshape(T, B, 3 * H)

    c_tbh = pl.pallas_call(
        _gru_recurrence_kernel,
        out_shape=jax.ShapeDtypeStruct((T, B, H), jnp.float32),
        grid=(1,),
        in_specs=[pl.BlockSpec((T, B, 3 * H), lambda i: (0, 0, 0)),
                  pl.BlockSpec((H, 3 * H), lambda i: (0, 0)),
                  pl.BlockSpec((1, 3 * H), lambda i: (0, 0))],
        out_specs=pl.BlockSpec((T, B, H), lambda i: (0, 0, 0)),
        scratch_shapes=[pltpu.VMEM((B, H), jnp.float32)],
        compiler_params=pltpu.CompilerParams(
            dimension_semantics=("arbitrary",),
            vmem_limit_bytes=_VMEM_LIMIT_BYTES),
    )(gx, w_hh_t, b_hh.reshape(1, -1))
    return c_tbh                                       # (T, B, H)


# ----------------------------------------------------------------------------
# Model glue (channels-last everywhere)
# ----------------------------------------------------------------------------
def im2col_channels_last(x, K, stride, pad):
    """x: (B, T_in, C) -> cols (B*T_out, K*C) [taps major, channels minor], T_out."""
    B, T_in, C = x.shape
    xp = jnp.pad(x, ((0, 0), (pad, pad), (0, 0)))
    T_out = (T_in + 2 * pad - K) // stride + 1
    idx = jnp.arange(T_out)[:, None] * stride + jnp.arange(K)[None, :]      # (T_out, K)
    patches = xp[:, idx, :]                                                 # (B, T_out, K, C)
    return patches.reshape(B * T_out, K * C), T_out


def conv_bn_relu_layer(x_btc, wf, gamma, beta, K, stride, pad, out_dtype, eps=1e-5):
    """Conv1d(bias=False) + BatchNorm1d (train-mode batch stats) + ReLU.
    x_btc: (B, T_in, C_in) channels-last -> (B, T_out, C_out) channels-last."""
    B = x_btc.shape[0]
    # TODO(synk): im2col still materializes a K-fold copy of the activation in HBM;
    # an in-kernel K-tap accumulation (strided pl.ds per tap) would remove that traffic.
    cols, T = im2col_channels_last(x_btc, K, stride, pad)
    out, s, sq = conv_matmul_stats(cols.astype(jnp.bfloat16), wf)           # Pallas
    M = B * T
    mean = s / M
    var = jnp.maximum(sq / M - mean * mean, 0.0)       # biased var (PyTorch BN), clamped
    scale = gamma * jax.lax.rsqrt(var + eps)
    shift = beta - mean * scale
    y = bn_relu(out, scale.reshape(1, -1), shift.reshape(1, -1), out_dtype)  # Pallas
    return y.reshape(B, T, -1)


def cpc_gru_forward(x, convs, gru_params):
    """Matches CPCGRU.forward: returns (z: (B, T, 512) f32, c: (B, latent_d, T) f32)."""
    x = x.astype(jnp.float32) / 255.0 - 0.5
    if x.ndim < 3:
        x = x[:, None, :]
    h = jnp.transpose(x, (0, 2, 1))                    # channels-last (B, L, 1)
    for li, layer in enumerate(convs):
        out_dtype = jnp.float32 if li == len(convs) - 1 else jnp.bfloat16
        h = conv_bn_relu_layer(h, layer["wf"], layer["gamma"], layer["beta"],
                               layer["k"], layer["s"], layer["p"], out_dtype)
    z = h                                              # (B, T, 512) f32
    c_tbh = gru_forward(z, *gru_params)                # (T, B, H)
    c = jnp.transpose(c_tbh, (1, 2, 0))                # (B, H, T)
    return z, c


# ----------------------------------------------------------------------------
# Parameters
# ----------------------------------------------------------------------------
def init_params(key, latent_d=256):
    """PyTorch-layout parameters for the 5 conv layers + single-layer GRU."""
    conv_cfg = [(1, 512, 10, 5, 3),
                (512, 512, 8, 4, 2),
                (512, 512, 4, 2, 1),
                (512, 512, 4, 2, 1),
                (512, 512, 4, 2, 1)]
    keys = jax.random.split(key, len(conv_cfg) + 4)
    convs = []
    for i, (cin, cout, k, s, p) in enumerate(conv_cfg):
        w = jax.random.normal(keys[i], (cout, cin, k), jnp.float32) * 0.05
        convs.append(dict(w=w,
                          gamma=jnp.ones((cout,), jnp.float32),
                          beta=jnp.zeros((cout,), jnp.float32),
                          k=k, s=s, p=p))
    # TODO(synk): BatchNorm running-mean/var buffer updates (training side effect)
    # are not materialized; only the forward pass with batch statistics is.
    H = latent_d
    w_ih = jax.random.normal(keys[-4], (3 * H, 512), jnp.float32) * 0.05
    w_hh = jax.random.normal(keys[-3], (3 * H, H), jnp.float32) * 0.05
    b_ih = jax.random.normal(keys[-2], (3 * H,), jnp.float32) * 0.05
    b_hh = jax.random.normal(keys[-1], (3 * H,), jnp.float32) * 0.05
    return convs, (w_ih, w_hh, b_ih, b_hh)


def prepare_params(convs, gru):
    """One-time layout prep (outside the forward): flatten conv weights to
    (K*C_in, C_out) bf16 for the channels-last im2col matmul, pre-transpose GRU
    weights (input-projection weight in bf16, recurrent weight kept f32)."""
    convs_p = []
    for layer in convs:
        w = layer["w"]                                 # (C_out, C_in, K)
        cout, cin, k = w.shape
        wf = jnp.transpose(w, (2, 1, 0)).reshape(k * cin, cout).astype(jnp.bfloat16)
        convs_p.append(dict(wf=wf, gamma=layer["gamma"], beta=layer["beta"],
                            k=layer["k"], s=layer["s"], p=layer["p"]))
    w_ih, w_hh, b_ih, b_hh = gru
    gru_p = (jnp.transpose(w_ih).astype(jnp.bfloat16),  # (512, 3H)
             jnp.transpose(w_hh),                       # (H, 3H), f32 recurrence
             b_ih, b_hh)
    return convs_p, gru_p


if __name__ == "__main__":
    key = jax.random.PRNGKey(0)
    kx, kp = jax.random.split(key)
    B, L, LATENT_D = 2, 480, 256                 # L // 160 == 3 output timesteps
    x = jax.random.uniform(kx, (B, 1, L), jnp.float32, 0.0, 255.0)
    convs_raw, gru_raw = init_params(kp, latent_d=LATENT_D)
    convs, gru_params = prepare_params(convs_raw, gru_raw)

    z, c = cpc_gru_forward(x, convs, gru_params)
    z, c = jax.block_until_ready((z, c))

    assert z.shape == (B, L // 160, 512), z.shape
    assert c.shape == (B, LATENT_D, L // 160), c.shape
    assert bool(jnp.all(jnp.isfinite(z))) and bool(jnp.all(jnp.isfinite(c)))
    print("KERNEL_OK")
</pallas_src>

<mosaic_0001>
module attributes {stable_mosaic.version = 11 : i64} {
  func.func @_conv_matmul_stats_kernel(%arg0: i32, %arg1: memref<192x10xbf16, #tpu.memory_space<vmem>>, %arg2: memref<10x512xbf16, #tpu.memory_space<vmem>>, %arg3: memref<192x512xbf16, #tpu.memory_space<vmem>>, %arg4: memref<1x1x512xf32, #tpu.memory_space<vmem>>, %arg5: memref<1x1x512xf32, #tpu.memory_space<vmem>>) attributes {dimension_semantics = [#tpu.dimension_semantics<parallel>], iteration_bounds = array<i64: 1>, scalar_prefetch = 0 : i64, scratch_operands = 0 : i64, tpu.core_type = #tpu.core_type<tc>, window_params = [{transform_indices = @transform_0, window_bounds = array<i64: 192, 10>}, {pipeline_mode = #tpu.pipeline_mode<synchronous>, transform_indices = @transform_1, window_bounds = array<i64: 10, 512>}, {transform_indices = @transform_2, window_bounds = array<i64: 192, 512>}, {transform_indices = @transform_3, window_bounds = array<i64: 1, 1, 512>}, {transform_indices = @transform_4, window_bounds = array<i64: 1, 1, 512>}]} {
    %c0 = arith.constant 0 : index
    %c0_0 = arith.constant 0 : index
    %0 = vector.load %arg1[%c0, %c0_0] : memref<192x10xbf16, #tpu.memory_space<vmem>>, vector<192x10xbf16>
    %c0_1 = arith.constant 0 : index
    %c0_2 = arith.constant 0 : index
    %1 = vector.load %arg2[%c0_1, %c0_2] : memref<10x512xbf16, #tpu.memory_space<vmem>>, vector<10x512xbf16>
    %cst = arith.constant dense<0.000000e+00> : vector<192x512xf32>
    %2 = tpu.matmul %0, %1, %cst {dimension_numbers = #tpu.dot_dimension_numbers<[1], [0], [0], [1], [0, 0, 1, 1], [], []>} : vector<192x10xbf16>, vector<10x512xbf16>, vector<192x512xf32> -> vector<192x512xf32>
    %3 = arith.truncf %2 : vector<192x512xf32> to vector<192x512xbf16>
    %c0_3 = arith.constant 0 : index
    %c0_4 = arith.constant 0 : index
    %4 = vector.load %arg3[%c0_3, %c0_4] : memref<192x512xbf16, #tpu.memory_space<vmem>>, vector<192x512xbf16>
    tpu.vector_store %arg3[%c0_3, %c0_4], %3 {strides = array<i32>} : memref<192x512xbf16, #tpu.memory_space<vmem>>, vector<192x512xbf16>,
    %cst_5 = arith.constant dense<0.000000e+00> : vector<512xf32>
    %5 = vector.multi_reduction <add>, %2, %cst_5 [0] : vector<192x512xf32> to vector<512xf32>
    %6 = vector.shape_cast %5 : vector<512xf32> to vector<1x512xf32>
    %c0_6 = arith.constant 0 : index
    %c0_7 = arith.constant 0 : index
    %c0_8 = arith.constant 0 : index
    %7 = vector.load %arg4[%c0_6, %c0_7, %c0_8] : memref<1x1x512xf32, #tpu.memory_space<vmem>>, vector<1x1x512xf32>
    %8 = vector.shape_cast %7 : vector<1x1x512xf32> to vector<1x512xf32>
    %9 = vector.shape_cast %6 : vector<1x512xf32> to vector<1x1x512xf32>
    tpu.vector_store %arg4[%c0_6, %c0_7, %c0_8], %9 {strides = array<i32>} : memref<1x1x512xf32, #tpu.memory_space<vmem>>, vector<1x1x512xf32>,
    %10 = arith.mulf %2, %2 : vector<192x512xf32>
    %cst_9 = arith.constant dense<0.000000e+00> : vector<512xf32>
    %11 = vector.multi_reduction <add>, %10, %cst_9 [0] : vector<192x512xf32> to vector<512xf32>
    %12 = vector.shape_cast %11 : vector<512xf32> to vector<1x512xf32>
    %c0_10 = arith.constant 0 : index
    %c0_11 = arith.constant 0 : index
    %c0_12 = arith.constant 0 : index
    %13 = vector.load %arg5[%c0_10, %c0_11, %c0_12] : memref<1x1x512xf32, #tpu.memory_space<vmem>>, vector<1x1x512xf32>
    %14 = vector.shape_cast %13 : vector<1x1x512xf32> to vector<1x512xf32>
    %15 = vector.shape_cast %12 : vector<1x512xf32> to vector<1x1x512xf32>
    tpu.vector_store %arg5[%c0_10, %c0_11, %c0_12], %15 {strides = array<i32>} : memref<1x1x512xf32, #tpu.memory_space<vmem>>, vector<1x1x512xf32>,
    return
  }
  func.func @transform_0(%arg0: i32) -> (i32, i32) {
    %c0_i32 = arith.constant 0 : i32
    %c0_i32_0 = arith.constant 0 : i32
    return %arg0, %c0_i32 : i32, i32
  }
  func.func @transform_1(%arg0: i32) -> (i32, i32) {
    %c0_i32 = arith.constant 0 : i32
    %c0_i32_0 = arith.constant 0 : i32
    %c0_i32_1 = arith.constant 0 : i32
    return %c0_i32, %c0_i32_0 : i32, i32
  }
  func.func @transform_2(%arg0: i32) -> (i32, i32) {
    %c0_i32 = arith.constant 0 : i32
    %c0_i32_0 = arith.constant 0 : i32
    return %arg0, %c0_i32 : i32, i32
  }
  func.func @transform_3(%arg0: i32) -> (i32, i32, i32) {
    %c0_i32 = arith.constant 0 : i32
    %c0_i32_0 = arith.constant 0 : i32
    %c0_i32_1 = arith.constant 0 : i32
    return %arg0, %c0_i32, %c0_i32_0 : i32, i32, i32
  }
  func.func @transform_4(%arg0: i32) -> (i32, i32, i32) {
    %c0_i32 = arith.constant 0 : i32
    %c0_i32_0 = arith.constant 0 : i32
    %c0_i32_1 = arith.constant 0 : i32
    return %arg0, %c0_i32, %c0_i32_0 : i32, i32, i32
  }
}

</mosaic_0001>

<bundles_post_ra>
// kernel: tpu_custom_call.1
= control target key start
LH: loop header
LB: loop body
LE: loop exit
PB: predicated region body
PF: predicated region fallthrough
CT: control target
= control target key end

     0   :  { %10 = vsyncpa [#allocation3], 0  ;;  %vm158_vm0 = vcmask 1044480   ;;  %s1502_s0 = inlined_call_operand.vmem [shape: bf16[192,10], index: 0, kind: input, shape index: {}]   ;;  %s1503_s1 = inlined_call_operand.vmem [shape: bf16[10,512], index: 1, kind: input, shape index: {}]   ;;  %s1504_s2 = inlined_call_operand.hbm [shape: bf16[192,512], index: 2, kind: output, shape index: {0}]   ;;  %s1505_s3 = inlined_call_operand.hbm [shape: f32[1,1,512], index: 3, kind: output, shape index: {1}]   ;;  %s1506_s4 = inlined_call_operand.hbm [shape: f32[1,1,512], index: 4, kind: output, shape index: {2}]  }
   0x1   :  { %v1001_v0 = vld [vmem:[%s1503_s1] sm:$0xf]  ;;  %v1077_v1 = vld [vmem:[%s1503_s1 + $0xc] sm:$0x10]  ;;  %v1075_v3 = vld [vmem:[%s1503_s1 + $0x4] sm:$0xf] }
   0x2   :  { %v1002_v2 = vor.u32 %v1077_v1, %v1001_v0  ;;  %v1003_v4 = vld [vmem:[%s1503_s1 + $0x10] sm:$0x10]  ;;  %v1009_v5 = vld [vmem:[%s1503_s1 + $0x8] sm:$0xf]  ;;  %v1078_v7 = vld [vmem:[%s1503_s1 + $0x14] sm:$0x10] }
   0x3   :  { %v1006_v6 = vor.u32 %v1075_v3, %v1003_v4  ;;  %v1076_v8 = vld [vmem:[%s1503_s1 + $0xc] sm:$0xf]  ;;  %v1011_v9 = vld [vmem:[%s1503_s1 + $0x18] sm:$0x10]  ;;  %v1010_v11 = vor.u32 %v1078_v7, %v1009_v5  ;;  %v1063_v13 = vld [vmem:[%s1502_s0] sm:$0xff] }
   0x4   :  { %v160_v10 = vsel %vm158_vm0, %v1002_v2, 0  ;;  %v1014_v12 = vor.u32 %v1076_v8, %v1011_v9 }
   0x5   :  { %11 = vsyncpa [#allocation5], 0  ;;  %178 = vmatpush.bf16.msra.mxu0 %v160_v10  ;;  %v163_v14 = vsel %vm158_vm0, %v1006_v6, 0  ;;  %vm121_vm1 = vcmask 80896   ;;  %v166_v15 = vsel %vm158_vm0, %v1010_v11, 0  ;;  %v1064_v17 = vld [vmem:[%s1502_s0 + $0x8] sm:$0xff] }
   0x6   :  { %247 = vmatpush.bf16.msra.mxu1 %v163_v14  ;;  %v169_v16 = vsel %vm158_vm0, %v1014_v12, 0  ;;  %316 = vmatpush.bf16.msra.mxu2 %v166_v15  ;;  %v1065_v18 = vld [vmem:[%s1502_s0 + $0x10] sm:$0xff]  ;;  %v1066_v19 = vld [vmem:[%s1502_s0 + $0x18] sm:$0xff]  ;;  %v1067_v20 = vld [vmem:[%s1502_s0 + $0x20] sm:$0xff]  ;;  %s908_s5 = sshll.u32 %s1504_s2, 4  ;;  %s1161_s2 = smov 256   ;;  %s909_s5 = int_to_ptr.hbm [resolvable:$true] %s908_s5 }
   0x7   :  { %385 = vmatpush.bf16.msra.mxu3 %v169_v16  ;;  %v1068_v21 = vld [vmem:[%s1502_s0 + $0x28] sm:$0xff]  ;;  %v1069_v22 = vld [vmem:[%s1502_s0 + $0x30] sm:$0xff]  ;;  %v1070_v23 = vld [vmem:[%s1502_s0 + $0x38] sm:$0xff]  ;;  %s1162_s6 = smov 16   ;;  %vm666_vm2 = vcmask 1040384   ;;  %vm668_vm3 = vcmask 1042434  }
   0x8   :  { %1015 = vmatmul.msk.bf16.vlgmr.msra.gmra.mxu0 %vm121_vm1, %v1063_v13  ;;  %v1071_v24 = vld [vmem:[%s1502_s0 + $0x40] sm:$0xff]  ;;  %v1072_v42 = vld [vmem:[%s1502_s0 + $0x48] sm:$0xff]  ;;  %s1163_s1 = smov [#allocation4]   ;;  %s922_s10 = sshll.u32 %s1505_s3, 4  ;;  %vm670_vm4 = vcmask 1041408   ;;  %s923_s10 = int_to_ptr.hbm [resolvable:$true] %s922_s10 }
   0x9   :  { %1027 = vmatmul.msk.bf16.vlgmr.msra.gmra.mxu1 %vm121_vm1, %v1063_v13  ;;  %1039 = vmatmul.msk.bf16.vlgmr.msra.gmra.mxu2 %vm121_vm1, %v1063_v13  ;;  %s920_s7 = sshll.u32 %s1163_s1, 4  ;;  %s1164_s11 = smov [#allocation6]   ;;  %s921_s7 = int_to_ptr.vmem [resolvable:$true] %s920_s7 }
   0xa   :  { %1051 = vmatmul.msk.bf16.vlgmr.msra.gmra.mxu3 %vm121_vm1, %v1063_v13  ;;  %s931_s12 = sshll.u32 %s1164_s11, 4  ;;  %s933_s3 = sshll.u32 %s1506_s4, 4  ;;  %s932_s12 = int_to_ptr.vmem [resolvable:$true] %s931_s12  ;;  %s934_s3 = int_to_ptr.hbm [resolvable:$true] %s933_s3 }
  0x18   :  { %1016 = vmatmul.msk.bf16.gmra.mxu0 %vm121_vm1, %v1064_v17 }
  0x19   :  { %1028 = vmatmul.msk.bf16.gmra.mxu1 %vm121_vm1, %v1064_v17  ;;  %1040 = vmatmul.msk.bf16.gmra.mxu2 %vm121_vm1, %v1064_v17 }
  0x1a   :  { %1052 = vmatmul.msk.bf16.gmra.mxu3 %vm121_vm1, %v1064_v17  ;;  %v1073_v17 = vld [vmem:[%s1502_s0 + $0x50] sm:$0xff] }
  0x28   :  { %1017 = vmatmul.msk.bf16.gmra.mxu0 %vm121_vm1, %v1065_v18 }
  0x29   :  { %1029 = vmatmul.msk.bf16.gmra.mxu1 %vm121_vm1, %v1065_v18  ;;  %1041 = vmatmul.msk.bf16.gmra.mxu2 %vm121_vm1, %v1065_v18 }
  0x2a   :  { %1053 = vmatmul.msk.bf16.gmra.mxu3 %vm121_vm1, %v1065_v18 }
  0x38   :  { %1018 = vmatmul.msk.bf16.gmra.mxu0 %vm121_vm1, %v1066_v19 }
  0x39   :  { %1030 = vmatmul.msk.bf16.gmra.mxu1 %vm121_vm1, %v1066_v19  ;;  %1042 = vmatmul.msk.bf16.gmra.mxu2 %vm121_vm1, %v1066_v19 }
  0x3a   :  { %1054 = vmatmul.msk.bf16.gmra.mxu3 %vm121_vm1, %v1066_v19 }
  0x48   :  { %1019 = vmatmul.msk.bf16.gmra.mxu0 %vm121_vm1, %v1067_v20 }
  0x49   :  { %1031 = vmatmul.msk.bf16.gmra.mxu1 %vm121_vm1, %v1067_v20  ;;  %1043 = vmatmul.msk.bf16.gmra.mxu2 %vm121_vm1, %v1067_v20 }
  0x4a   :  { %1055 = vmatmul.msk.bf16.gmra.mxu3 %vm121_vm1, %v1067_v20 }
  0x58   :  { %1020 = vmatmul.msk.bf16.gmra.mxu0 %vm121_vm1, %v1068_v21 }
  0x59   :  { %1032 = vmatmul.msk.bf16.gmra.mxu1 %vm121_vm1, %v1068_v21  ;;  %1044 = vmatmul.msk.bf16.gmra.mxu2 %vm121_vm1, %v1068_v21 }
  0x5a   :  { %1056 = vmatmul.msk.bf16.gmra.mxu3 %vm121_vm1, %v1068_v21 }
  0x68   :  { %1021 = vmatmul.msk.bf16.gmra.mxu0 %vm121_vm1, %v1069_v22 }
  0x69   :  { %1033 = vmatmul.msk.bf16.gmra.mxu1 %vm121_vm1, %v1069_v22  ;;  %1045 = vmatmul.msk.bf16.gmra.mxu2 %vm121_vm1, %v1069_v22 }
  0x6a   :  { %1057 = vmatmul.msk.bf16.gmra.mxu3 %vm121_vm1, %v1069_v22 }
  0x78   :  { %1022 = vmatmul.msk.bf16.gmra.mxu0 %vm121_vm1, %v1070_v23 }
  0x79   :  { %1034 = vmatmul.msk.bf16.gmra.mxu1 %vm121_vm1, %v1070_v23  ;;  %1046 = vmatmul.msk.bf16.gmra.mxu2 %vm121_vm1, %v1070_v23 }
  0x7a   :  { %1058 = vmatmul.msk.bf16.gmra.mxu3 %vm121_vm1, %v1070_v23 }
  0x85   :  { %v180_v25 = vpop.f32.mrf.mxu0 }
  0x86   :  { %v249_v26 = vpop.f32.mrf.mxu1  ;;  %v678_v28 = vmul.f32 %v180_v25, %v180_v25 }
  0x87   :  { %v447_v27 = vpack.c.bf16 %v249_v26, %v180_v25  ;;  %v679_v38 = vmul.f32 %v249_v26, %v249_v26 }
  0x88   :  { %1023 = vmatmul.msk.bf16.gmra.mxu0 %vm121_vm1, %v1071_v24 }
  0x89   :  { %495 = vst [vmem:[#allocation2] sm:$0xff] %v447_v27  ;;  %1035 = vmatmul.msk.bf16.gmra.mxu1 %vm121_vm1, %v1071_v24  ;;  %1047 = vmatmul.msk.bf16.gmra.mxu2 %vm121_vm1, %v1071_v24 }
  0x8a   :  { %1059 = vmatmul.msk.bf16.gmra.mxu3 %vm121_vm1, %v1071_v24 }
  0x8c   :  { %v318_v29 = vpop.f32.mrf.mxu2 }
  0x8d   :  { %v387_v30 = vpop.f32.mrf.mxu3  ;;  %v182_v32 = vpop.f32.mrf.mxu0  ;;  %v680_v43 = vmul.f32 %v318_v29, %v318_v29 }
  0x8e   :  { %v448_v31 = vpack.c.bf16 %v387_v30, %v318_v29  ;;  %v251_v33 = vpop.f32.mrf.mxu1  ;;  %v543_v34 = vadd.f32 %v182_v32, %v180_v25  ;;  %v682_v35 = vmul.f32 %v182_v32, %v182_v32  ;;  %v681_v44 = vmul.f32 %v387_v30, %v387_v30 }
  0x8f   :  { %v449_v36 = vpack.c.bf16 %v251_v33, %v182_v32  ;;  %v572_v37 = vadd.f32 %v251_v33, %v249_v26  ;;  %v683_v39 = vmul.f32 %v251_v33, %v251_v33 }
  0x90   :  { %496 = vst [vmem:[#allocation2 + $0x8] sm:$0xff] %v448_v31  ;;  %v774_v40 = vadd.f32 %v682_v35, %v678_v28 }
  0x91   :  { %497 = vst [vmem:[#allocation2 + $0x10] sm:$0xff] %v449_v36  ;;  %v803_v41 = vadd.f32 %v683_v39, %v679_v38 }
  0x94   :  { %v320_v45 = vpop.f32.mrf.mxu2 }
  0x95   :  { %v389_v46 = vpop.f32.mrf.mxu3  ;;  %v601_v47 = vadd.f32 %v320_v45, %v318_v29  ;;  %v684_v48 = vmul.f32 %v320_v45, %v320_v45  ;;  %v185_v51 = vpop.f32.mrf.mxu0 }
  0x96   :  { %v450_v49 = vpack.c.bf16 %v389_v46, %v320_v45  ;;  %v630_v50 = vadd.f32 %v389_v46, %v387_v30  ;;  %v254_v52 = vpop.f32.mrf.mxu1  ;;  %v685_v53 = vmul.f32 %v389_v46, %v389_v46  ;;  %v544_v54 = vadd.f32 %v543_v34, %v185_v51 }
  0x97   :  { %v686_v55 = vmul.f32 %v185_v51, %v185_v51  ;;  %v451_v56 = vpack.c.bf16 %v254_v52, %v185_v51  ;;  %v832_v57 = vadd.f32 %v684_v48, %v680_v43  ;;  %v573_v58 = vadd.f32 %v572_v37, %v254_v52 }
  0x98   :  { %498 = vst [vmem:[#allocation2 + $0x18] sm:$0xff] %v450_v49  ;;  %v687_v59 = vmul.f32 %v254_v52, %v254_v52  ;;  %1024 = vmatmul.msk.bf16.gmra.mxu0 %vm121_vm1, %v1072_v42  ;;  %v861_v60 = vadd.f32 %v685_v53, %v681_v44 }
  0x99   :  { %v775_v61 = vadd.f32 %v774_v40, %v686_v55  ;;  %499 = vst [vmem:[#allocation2 + $0x20] sm:$0xff] %v451_v56  ;;  %1036 = vmatmul.msk.bf16.gmra.mxu1 %vm121_vm1, %v1072_v42  ;;  %1048 = vmatmul.msk.bf16.gmra.mxu2 %vm121_vm1, %v1072_v42 }
  0x9a   :  { %v804_v62 = vadd.f32 %v803_v41, %v687_v59  ;;  %1060 = vmatmul.msk.bf16.gmra.mxu3 %vm121_vm1, %v1072_v42 }
  0x9c   :  { %v323_v63 = vpop.f32.mrf.mxu2 }
  0x9d   :  { %v392_v0 = vpop.f32.mrf.mxu3  ;;  %v602_v1 = vadd.f32 %v601_v47, %v323_v63  ;;  %v688_v2 = vmul.f32 %v323_v63, %v323_v63  ;;  %v187_v5 = vpop.f32.mrf.mxu0 }
  0x9e   :  { %v452_v3 = vpack.c.bf16 %v392_v0, %v323_v63  ;;  %v631_v4 = vadd.f32 %v630_v50, %v392_v0  ;;  %v256_v6 = vpop.f32.mrf.mxu1  ;;  %v689_v7 = vmul.f32 %v392_v0, %v392_v0  ;;  %v545_v8 = vadd.f32 %v544_v54, %v187_v5  ;;  %v1074_v54 = vld [vmem:[%s1502_s0 + $0x58] sm:$0xff]  ;;  %s1160_s0 = smov [#allocation2]  }
  0x9f   :  { %v690_v9 = vmul.f32 %v187_v5, %v187_v5  ;;  %v453_v10 = vpack.c.bf16 %v256_v6, %v187_v5  ;;  %v833_v11 = vadd.f32 %v832_v57, %v688_v2  ;;  %v574_v12 = vadd.f32 %v573_v58, %v256_v6  ;;  %s1476_s28 = sshll.u32 %s1160_s0, 4  ;;  %s907_s28 = int_to_ptr.vmem [resolvable:$true] %s1476_s28 }
  0xa0   :  { %500 = vst [vmem:[#allocation2 + $0x28] sm:$0xff] %v452_v3  ;;  %v691_v13 = vmul.f32 %v256_v6, %v256_v6  ;;  %v862_v14 = vadd.f32 %v861_v60, %v689_v7 }
  0xa1   :  { %v776_v15 = vadd.f32 %v775_v61, %v690_v9  ;;  %501 = vst [vmem:[#allocation2 + $0x30] sm:$0xff] %v453_v10 }
  0xa2   :  { %v805_v16 = vadd.f32 %v804_v62, %v691_v13 }
  0xa4   :  { %v325_v18 = vpop.f32.mrf.mxu2 }
  0xa5   :  { %v394_v19 = vpop.f32.mrf.mxu3  ;;  %v603_v20 = vadd.f32 %v602_v1, %v325_v18  ;;  %v692_v21 = vmul.f32 %v325_v18, %v325_v18  ;;  %v190_v24 = vpop.f32.mrf.mxu0 }
  0xa6   :  { %v454_v22 = vpack.c.bf16 %v394_v19, %v325_v18  ;;  %v632_v23 = vadd.f32 %v631_v4, %v394_v19  ;;  %v259_v25 = vpop.f32.mrf.mxu1  ;;  %v693_v26 = vmul.f32 %v394_v19, %v394_v19  ;;  %v546_v27 = vadd.f32 %v545_v8, %v190_v24 }
  0xa7   :  { %v694_v28 = vmul.f32 %v190_v24, %v190_v24  ;;  %v455_v29 = vpack.c.bf16 %v259_v25, %v190_v24  ;;  %v834_v30 = vadd.f32 %v833_v11, %v692_v21  ;;  %v575_v31 = vadd.f32 %v574_v12, %v259_v25 }
  0xa8   :  { %502 = vst [vmem:[#allocation2 + $0x38] sm:$0xff] %v454_v22  ;;  %v695_v32 = vmul.f32 %v259_v25, %v259_v25  ;;  %1025 = vmatmul.msk.bf16.gmra.mxu0 %vm121_vm1, %v1073_v17  ;;  %v863_v33 = vadd.f32 %v862_v14, %v693_v26 }
  0xa9   :  { %v777_v34 = vadd.f32 %v776_v15, %v694_v28  ;;  %503 = vst [vmem:[#allocation2 + $0x40] sm:$0xff] %v455_v29  ;;  %1037 = vmatmul.msk.bf16.gmra.mxu1 %vm121_vm1, %v1073_v17  ;;  %1049 = vmatmul.msk.bf16.gmra.mxu2 %vm121_vm1, %v1073_v17 }
  0xaa   :  { %v806_v35 = vadd.f32 %v805_v16, %v695_v32  ;;  %1061 = vmatmul.msk.bf16.gmra.mxu3 %vm121_vm1, %v1073_v17 }
  0xac   :  { %v328_v36 = vpop.f32.mrf.mxu2 }
  0xad   :  { %v397_v37 = vpop.f32.mrf.mxu3  ;;  %v604_v38 = vadd.f32 %v603_v20, %v328_v36  ;;  %v696_v39 = vmul.f32 %v328_v36, %v328_v36  ;;  %v192_v42 = vpop.f32.mrf.mxu0 }
  0xae   :  { %v456_v40 = vpack.c.bf16 %v397_v37, %v328_v36  ;;  %v633_v41 = vadd.f32 %v632_v23, %v397_v37  ;;  %v261_v43 = vpop.f32.mrf.mxu1  ;;  %v697_v44 = vmul.f32 %v397_v37, %v397_v37  ;;  %v547_v45 = vadd.f32 %v546_v27, %v192_v42 }
  0xaf   :  { %v698_v46 = vmul.f32 %v192_v42, %v192_v42  ;;  %v457_v47 = vpack.c.bf16 %v261_v43, %v192_v42  ;;  %v835_v48 = vadd.f32 %v834_v30, %v696_v39  ;;  %v576_v49 = vadd.f32 %v575_v31, %v261_v43 }
  0xb0   :  { %504 = vst [vmem:[#allocation2 + $0x48] sm:$0xff] %v456_v40  ;;  %v699_v50 = vmul.f32 %v261_v43, %v261_v43  ;;  %v864_v51 = vadd.f32 %v863_v33, %v697_v44 }
  0xb1   :  { %v778_v52 = vadd.f32 %v777_v34, %v698_v46  ;;  %505 = vst [vmem:[#allocation2 + $0x50] sm:$0xff] %v457_v47 }
  0xb2   :  { %v807_v53 = vadd.f32 %v806_v35, %v699_v50 }
  0xb4   :  { %v330_v55 = vpop.f32.mrf.mxu2 }
  0xb5   :  { %v399_v56 = vpop.f32.mrf.mxu3  ;;  %v605_v57 = vadd.f32 %v604_v38, %v330_v55  ;;  %v700_v58 = vmul.f32 %v330_v55, %v330_v55  ;;  %v195_v61 = vpop.f32.mrf.mxu0 }
  0xb6   :  { %v458_v59 = vpack.c.bf16 %v399_v56, %v330_v55  ;;  %v634_v60 = vadd.f32 %v633_v41, %v399_v56  ;;  %v264_v62 = vpop.f32.mrf.mxu1  ;;  %v701_v63 = vmul.f32 %v399_v56, %v399_v56  ;;  %v548_v0 = vadd.f32 %v547_v45, %v195_v61 }
  0xb7   :  { %v702_v1 = vmul.f32 %v195_v61, %v195_v61  ;;  %v459_v2 = vpack.c.bf16 %v264_v62, %v195_v61  ;;  %v836_v3 = vadd.f32 %v835_v48, %v700_v58  ;;  %v577_v4 = vadd.f32 %v576_v49, %v264_v62 }
  0xb8   :  { %506 = vst [vmem:[#allocation2 + $0x58] sm:$0xff] %v458_v59  ;;  %v703_v5 = vmul.f32 %v264_v62, %v264_v62  ;;  %1026 = vmatmul.msk.bf16.gmra.mxu0 %vm121_vm1, %v1074_v54  ;;  %v865_v6 = vadd.f32 %v864_v51, %v701_v63 }
  0xb9   :  { %v779_v7 = vadd.f32 %v778_v52, %v702_v1  ;;  %507 = vst [vmem:[#allocation2 + $0x60] sm:$0xff] %v459_v2  ;;  %1038 = vmatmul.msk.bf16.gmra.mxu1 %vm121_vm1, %v1074_v54  ;;  %1050 = vmatmul.msk.bf16.gmra.mxu2 %vm121_vm1, %v1074_v54 }
  0xba   :  { %v808_v8 = vadd.f32 %v807_v53, %v703_v5  ;;  %1062 = vmatmul.msk.bf16.gmra.mxu3 %vm121_vm1, %v1074_v54 }
  0xbc   :  { %v333_v9 = vpop.f32.mrf.mxu2 }
  0xbd   :  { %v402_v10 = vpop.f32.mrf.mxu3  ;;  %v606_v11 = vadd.f32 %v605_v57, %v333_v9  ;;  %v704_v12 = vmul.f32 %v333_v9, %v333_v9  ;;  %v197_v15 = vpop.f32.mrf.mxu0 }
  0xbe   :  { %v460_v13 = vpack.c.bf16 %v402_v10, %v333_v9  ;;  %v635_v14 = vadd.f32 %v634_v60, %v402_v10  ;;  %v266_v16 = vpop.f32.mrf.mxu1  ;;  %v705_v17 = vmul.f32 %v402_v10, %v402_v10  ;;  %v549_v18 = vadd.f32 %v548_v0, %v197_v15 }
  0xbf   :  { %v706_v19 = vmul.f32 %v197_v15, %v197_v15  ;;  %v461_v20 = vpack.c.bf16 %v266_v16, %v197_v15  ;;  %v837_v21 = vadd.f32 %v836_v3, %v704_v12  ;;  %v578_v22 = vadd.f32 %v577_v4, %v266_v16 }
  0xc0   :  { %508 = vst [vmem:[#allocation2 + $0x68] sm:$0xff] %v460_v13  ;;  %v707_v23 = vmul.f32 %v266_v16, %v266_v16  ;;  %v866_v24 = vadd.f32 %v865_v6, %v705_v17 }
  0xc1   :  { %v780_v25 = vadd.f32 %v779_v7, %v706_v19  ;;  %509 = vst [vmem:[#allocation2 + $0x70] sm:$0xff] %v461_v20 }
  0xc2   :  { %v809_v26 = vadd.f32 %v808_v8, %v707_v23 }
  0xc4   :  { %v335_v27 = vpop.f32.mrf.mxu2 }
  0xc5   :  { %v404_v28 = vpop.f32.mrf.mxu3  ;;  %v607_v29 = vadd.f32 %v606_v11, %v335_v27  ;;  %v708_v30 = vmul.f32 %v335_v27, %v335_v27  ;;  %v200_v33 = vpop.f32.mrf.mxu0 }
  0xc6   :  { %v462_v31 = vpack.c.bf16 %v404_v28, %v335_v27  ;;  %v636_v32 = vadd.f32 %v635_v14, %v404_v28  ;;  %v269_v34 = vpop.f32.mrf.mxu1  ;;  %v709_v35 = vmul.f32 %v404_v28, %v404_v28  ;;  %v550_v36 = vadd.f32 %v549_v18, %v200_v33 }
  0xc7   :  { %v710_v37 = vmul.f32 %v200_v33, %v200_v33  ;;  %v463_v38 = vpack.c.bf16 %v269_v34, %v200_v33  ;;  %v838_v39 = vadd.f32 %v837_v21, %v708_v30  ;;  %v579_v40 = vadd.f32 %v578_v22, %v269_v34 }
  0xc8   :  { %510 = vst [vmem:[#allocation2 + $0x78] sm:$0xff] %v462_v31  ;;  %v711_v41 = vmul.f32 %v269_v34, %v269_v34  ;;  %v867_v42 = vadd.f32 %v866_v24, %v709_v35 }
  0xc9   :  { %v781_v43 = vadd.f32 %v780_v25, %v710_v37  ;;  %511 = vst [vmem:[#allocation2 + $0x80] sm:$0xff] %v463_v38 }
  0xca   :  { %v810_v44 = vadd.f32 %v809_v26, %v711_v41 }
  0xcc   :  { %v338_v45 = vpop.f32.mrf.mxu2 }
  0xcd   :  { %v407_v46 = vpop.f32.mrf.mxu3  ;;  %v608_v47 = vadd.f32 %v607_v29, %v338_v45  ;;  %v712_v48 = vmul.f32 %v338_v45, %v338_v45  ;;  %v202_v51 = vpop.f32.mrf.mxu0 }
  0xce   :  { %v464_v49 = vpack.c.bf16 %v407_v46, %v338_v45  ;;  %v637_v50 = vadd.f32 %v636_v32, %v407_v46  ;;  %v271_v52 = vpop.f32.mrf.mxu1  ;;  %v713_v53 = vmul.f32 %v407_v46, %v407_v46  ;;  %v551_v54 = vadd.f32 %v550_v36, %v202_v51 }
  0xcf   :  { %v714_v55 = vmul.f32 %v202_v51, %v202_v51  ;;  %v465_v56 = vpack.c.bf16 %v271_v52, %v202_v51  ;;  %v839_v57 = vadd.f32 %v838_v39, %v712_v48  ;;  %v580_v58 = vadd.f32 %v579_v40, %v271_v52 }
  0xd0   :  { %512 = vst [vmem:[#allocation2 + $0x88] sm:$0xff] %v464_v49  ;;  %v715_v59 = vmul.f32 %v271_v52, %v271_v52  ;;  %v868_v60 = vadd.f32 %v867_v42, %v713_v53 }
  0xd1   :  { %v782_v61 = vadd.f32 %v781_v43, %v714_v55  ;;  %513 = vst [vmem:[#allocation2 + $0x90] sm:$0xff] %v465_v56 }
  0xd2   :  { %v811_v62 = vadd.f32 %v810_v44, %v715_v59 }
  0xd4   :  { %v340_v63 = vpop.f32.mrf.mxu2 }
  0xd5   :  { %v409_v0 = vpop.f32.mrf.mxu3  ;;  %v609_v1 = vadd.f32 %v608_v47, %v340_v63  ;;  %v716_v2 = vmul.f32 %v340_v63, %v340_v63  ;;  %v205_v5 = vpop.f32.mrf.mxu0 }
  0xd6   :  { %v466_v3 = vpack.c.bf16 %v409_v0, %v340_v63  ;;  %v638_v4 = vadd.f32 %v637_v50, %v409_v0  ;;  %v274_v6 = vpop.f32.mrf.mxu1  ;;  %v717_v7 = vmul.f32 %v409_v0, %v409_v0  ;;  %v552_v8 = vadd.f32 %v551_v54, %v205_v5 }
  0xd7   :  { %v718_v9 = vmul.f32 %v205_v5, %v205_v5  ;;  %v467_v10 = vpack.c.bf16 %v274_v6, %v205_v5  ;;  %v840_v11 = vadd.f32 %v839_v57, %v716_v2  ;;  %v581_v12 = vadd.f32 %v580_v58, %v274_v6 }
  0xd8   :  { %514 = vst [vmem:[#allocation2 + $0x98] sm:$0xff] %v466_v3  ;;  %v719_v13 = vmul.f32 %v274_v6, %v274_v6  ;;  %v869_v14 = vadd.f32 %v868_v60, %v717_v7 }
  0xd9   :  { %v783_v15 = vadd.f32 %v782_v61, %v718_v9  ;;  %515 = vst [vmem:[#allocation2 + $0xa0] sm:$0xff] %v467_v10 }
  0xda   :  { %v812_v16 = vadd.f32 %v811_v62, %v719_v13 }
  0xdc   :  { %v343_v17 = vpop.f32.mrf.mxu2 }
  0xdd   :  { %v412_v18 = vpop.f32.mrf.mxu3  ;;  %v610_v19 = vadd.f32 %v609_v1, %v343_v17  ;;  %v720_v20 = vmul.f32 %v343_v17, %v343_v17  ;;  %v207_v23 = vpop.f32.mrf.mxu0 }
  0xde   :  { %v468_v21 = vpack.c.bf16 %v412_v18, %v343_v17  ;;  %v639_v22 = vadd.f32 %v638_v4, %v412_v18  ;;  %v276_v24 = vpop.f32.mrf.mxu1  ;;  %v721_v25 = vmul.f32 %v412_v18, %v412_v18  ;;  %v553_v26 = vadd.f32 %v552_v8, %v207_v23 }
  0xdf   :  { %v722_v27 = vmul.f32 %v207_v23, %v207_v23  ;;  %v469_v28 = vpack.c.bf16 %v276_v24, %v207_v23  ;;  %v841_v29 = vadd.f32 %v840_v11, %v720_v20  ;;  %v582_v30 = vadd.f32 %v581_v12, %v276_v24 }
  0xe0   :  { %516 = vst [vmem:[#allocation2 + $0xa8] sm:$0xff] %v468_v21  ;;  %v723_v31 = vmul.f32 %v276_v24, %v276_v24  ;;  %v870_v32 = vadd.f32 %v869_v14, %v721_v25 }
  0xe1   :  { %v784_v33 = vadd.f32 %v783_v15, %v722_v27  ;;  %517 = vst [vmem:[#allocation2 + $0xb0] sm:$0xff] %v469_v28 }
  0xe2   :  { %v813_v34 = vadd.f32 %v812_v16, %v723_v31 }
  0xe4   :  { %v345_v35 = vpop.f32.mrf.mxu2 }
  0xe5   :  { %v414_v36 = vpop.f32.mrf.mxu3  ;;  %v611_v37 = vadd.f32 %v610_v19, %v345_v35  ;;  %v724_v38 = vmul.f32 %v345_v35, %v345_v35  ;;  %v210_v41 = vpop.f32.mrf.mxu0 }
  0xe6   :  { %v470_v39 = vpack.c.bf16 %v414_v36, %v345_v35  ;;  %v640_v40 = vadd.f32 %v639_v22, %v414_v36  ;;  %v279_v42 = vpop.f32.mrf.mxu1  ;;  %v725_v43 = vmul.f32 %v414_v36, %v414_v36  ;;  %v554_v44 = vadd.f32 %v553_v26, %v210_v41 }
  0xe7   :  { %v726_v45 = vmul.f32 %v210_v41, %v210_v41  ;;  %v471_v46 = vpack.c.bf16 %v279_v42, %v210_v41  ;;  %v842_v47 = vadd.f32 %v841_v29, %v724_v38  ;;  %v583_v48 = vadd.f32 %v582_v30, %v279_v42 }
  0xe8   :  { %518 = vst [vmem:[#allocation2 + $0xb8] sm:$0xff] %v470_v39  ;;  %v727_v49 = vmul.f32 %v279_v42, %v279_v42  ;;  %v871_v50 = vadd.f32 %v870_v32, %v725_v43 }
  0xe9   :  { %v785_v51 = vadd.f32 %v784_v33, %v726_v45  ;;  %519 = vst [vmem:[#allocation2 + $0xc0] sm:$0xff] %v471_v46 }
  0xea   :  { %v814_v52 = vadd.f32 %v813_v34, %v727_v49 }
  0xec   :  { %v348_v53 = vpop.f32.mrf.mxu2 }
  0xed   :  { %v417_v54 = vpop.f32.mrf.mxu3  ;;  %v1302_v55 = vadd.f32 %v611_v37, %v348_v53  ;;  %v728_v56 = vmul.f32 %v348_v53, %v348_v53  ;;  %v212_v59 = vpop.f32.mrf.mxu0 }
  0xee   :  { %v472_v57 = vpack.c.bf16 %v417_v54, %v348_v53  ;;  %v1304_v58 = vadd.f32 %v640_v40, %v417_v54  ;;  %v281_v60 = vpop.f32.mrf.mxu1  ;;  %v729_v61 = vmul.f32 %v417_v54, %v417_v54  ;;  %v555_v62 = vadd.f32 %v554_v44, %v212_v59 }
  0xef   :  { %v730_v63 = vmul.f32 %v212_v59, %v212_v59  ;;  %v473_v0 = vpack.c.bf16 %v281_v60, %v212_v59  ;;  %v1306_v1 = vadd.f32 %v842_v47, %v728_v56  ;;  %v1308_v2 = vadd.f32 %v583_v48, %v281_v60 }
  0xf0   :  { %520 = vst [vmem:[#allocation2 + $0xc8] sm:$0xff] %v472_v57  ;;  %v731_v3 = vmul.f32 %v281_v60, %v281_v60  ;;  %v1310_v4 = vadd.f32 %v871_v50, %v729_v61 }
  0xf1   :  { %v786_v5 = vadd.f32 %v785_v51, %v730_v63  ;;  %521 = vst [vmem:[#allocation2 + $0xd0] sm:$0xff] %v473_v0 }
  0xf2   :  { %v815_v6 = vadd.f32 %v814_v52, %v731_v3 }
  0xf4   :  { %v350_v7 = vpop.f32.mrf.mxu2 }
  0xf5   :  { %v419_v8 = vpop.f32.mrf.mxu3  ;;  %v215_v10 = vpop.f32.mrf.mxu0  ;;  %v732_v48 = vmul.f32 %v350_v7, %v350_v7  ;;  %v613_v50 = vadd.f32 %v1302_v55, %v350_v7 }
  0xf6   :  { %v474_v9 = vpack.c.bf16 %v419_v8, %v350_v7  ;;  %v1312_v11 = vpop.f32.mrf.mxu1  ;;  %v1314_v12 = vadd.f32 %v555_v62, %v215_v10  ;;  %v734_v13 = vmul.f32 %v215_v10, %v215_v10  ;;  %v733_v49 = vmul.f32 %v419_v8, %v419_v8 }
  0xf7   :  { %v475_v14 = vpack.c.bf16 %v1312_v11, %v215_v10  ;;  %v735_v15 = vmul.f32 %v1312_v11, %v1312_v11  ;;  %v642_v53 = vadd.f32 %v1304_v58, %v419_v8  ;;  %v844_v61 = vadd.f32 %v1306_v1, %v732_v48 }
  0xf8   :  { %522 = vst [vmem:[#allocation2 + $0xd8] sm:$0xff] %v474_v9  ;;  %v1319_v16 = vadd.f32 %v786_v5, %v734_v13  ;;  %v873_v58 = vadd.f32 %v1310_v4, %v733_v49  ;;  %v585_v0 = vadd.f32 %v1308_v2, %v1312_v11 }
  0xf9   :  { %523 = vst [vmem:[#allocation2 + $0xe0] sm:$0xff] %v475_v14  ;;  %v1321_v17 = vadd.f32 %v815_v6, %v735_v15 }
  0xfc   :  { %v353_v18 = vpop.f32.mrf.mxu2 }
  0xfd   :  { %v422_v19 = vpop.f32.mrf.mxu3  ;;  %v217_v21 = vpop.f32.mrf.mxu0  ;;  %v736_v54 = vmul.f32 %v353_v18, %v353_v18  ;;  %v614_v3 = vadd.f32 %v613_v50, %v353_v18 }
  0xfe   :  { %v476_v20 = vpack.c.bf16 %v422_v19, %v353_v18  ;;  %v1323_v22 = vpop.f32.mrf.mxu1  ;;  %v737_v56 = vmul.f32 %v422_v19, %v422_v19  ;;  %v738_v62 = vmul.f32 %v217_v21, %v217_v21  ;;  %v643_v6 = vadd.f32 %v642_v53, %v422_v19 }
  0xff   :  { %v477_v23 = vpack.c.bf16 %v1323_v22, %v217_v21  ;;  %v739_v55 = vmul.f32 %v1323_v22, %v1323_v22  ;;  %v557_v1 = vadd.f32 %v1314_v12, %v217_v21  ;;  %v845_v9 = vadd.f32 %v844_v61, %v736_v54 }
 0x100   :  { %524 = vst [vmem:[#allocation2 + $0xe8] sm:$0xff] %v476_v20  ;;  %v874_v4 = vadd.f32 %v873_v58, %v737_v56  ;;  %v586_v10 = vadd.f32 %v585_v0, %v1323_v22  ;;  %v788_v11 = vadd.f32 %v1319_v16, %v738_v62 }
 0x101   :  { %525 = vst [vmem:[#allocation2 + $0xf0] sm:$0xff] %v477_v23  ;;  %v817_v13 = vadd.f32 %v1321_v17, %v739_v55 }
 0x104   :  { %v1326_v24 = vpop.f32.mrf.mxu2 }
 0x105   :  { %v1328_v25 = vpop.f32.mrf.mxu3  ;;  %v1332_v27 = vpop.f32.mrf.mxu0  ;;  %v740_v5 = vmul.f32 %v1326_v24, %v1326_v24  ;;  %v615_v12 = vadd.f32 %v614_v3, %v1326_v24 }
 0x106   :  { %v478_v26 = vpack.c.bf16 %v1328_v25, %v1326_v24  ;;  %v1334_v28 = vpop.f32.mrf.mxu1  ;;  %v741_v7 = vmul.f32 %v1328_v25, %v1328_v25  ;;  %v742_v8 = vmul.f32 %v1332_v27, %v1332_v27  ;;  %v644_v14 = vadd.f32 %v643_v6, %v1328_v25 }
 0x107   :  { %v479_v29 = vpack.c.bf16 %v1334_v28, %v1332_v27  ;;  %v743_v2 = vmul.f32 %v1334_v28, %v1334_v28  ;;  %v846_v15 = vadd.f32 %v845_v9, %v740_v5  ;;  %v558_v18 = vadd.f32 %v557_v1, %v1332_v27 }
 0x108   :  { %526 = vst [vmem:[#allocation2 + $0xf8] sm:$0xff] %v478_v26  ;;  %v587_v19 = vadd.f32 %v586_v10, %v1334_v28  ;;  %v875_v21 = vadd.f32 %v874_v4, %v741_v7  ;;  %v789_v22 = vadd.f32 %v788_v11, %v742_v8 }
 0x109   :  { %527 = vst [vmem:[#allocation2 + $0x100] sm:$0xff] %v479_v29  ;;  %v818_v25 = vadd.f32 %v817_v13, %v743_v2 }
 0x10c   :  { %v1338_v30 = vpop.f32.mrf.mxu2 }
 0x10d   :  { %v1340_v31 = vpop.f32.mrf.mxu3  ;;  %v1344_v33 = vpop.f32.mrf.mxu0  ;;  %v744_v20 = vmul.f32 %v1338_v30, %v1338_v30  ;;  %v616_v26 = vadd.f32 %v615_v12, %v1338_v30 }
 0x10e   :  { %v480_v32 = vpack.c.bf16 %v1340_v31, %v1338_v30  ;;  %v1346_v34 = vpop.f32.mrf.mxu1  ;;  %v745_v23 = vmul.f32 %v1340_v31, %v1340_v31  ;;  %v746_v16 = vmul.f32 %v1344_v33, %v1344_v33 }
 0x10f   :  { %v481_v35 = vpack.c.bf16 %v1346_v34, %v1344_v33  ;;  %v747_v27 = vmul.f32 %v1346_v34, %v1346_v34  ;;  %v847_v30 = vadd.f32 %v846_v15, %v744_v20  ;;  %v588_v53 = vadd.f32 %v587_v19, %v1346_v34 }
 0x110   :  { %528 = vst [vmem:[#allocation2 + $0x108] sm:$0xff] %v480_v32  ;;  %v876_v50 = vadd.f32 %v875_v21, %v745_v23 }
 0x111   :  { %529 = vst [vmem:[#allocation2 + $0x110] sm:$0xff] %v481_v35  ;;  %v645_v35 = vadd.f32 %v644_v14, %v1340_v31  ;;  %v790_v31 = vadd.f32 %v789_v22, %v746_v16  ;;  %v819_v56 = vadd.f32 %v818_v25, %v747_v27 }
 0x114   :  { %v1350_v36 = vpop.f32.mrf.mxu2 }
 0x115   :  { %v1352_v37 = vpop.f32.mrf.mxu3  ;;  %v1356_v39 = vpop.f32.mrf.mxu0 }
 0x116   :  { %v482_v38 = vpack.c.bf16 %v1352_v37, %v1350_v36  ;;  %v1358_v40 = vpop.f32.mrf.mxu1  ;;  %v750_v48 = vmul.f32 %v1356_v39, %v1356_v39 }
 0x117   :  { %v483_v41 = vpack.c.bf16 %v1358_v40, %v1356_v39  ;;  %v751_v49 = vmul.f32 %v1358_v40, %v1358_v40 }
 0x118   :  { %530 = vst [vmem:[#allocation2 + $0x118] sm:$0xff] %v482_v38  ;;  %v748_v38 = vmul.f32 %v1350_v36, %v1350_v36  ;;  %v791_v0 = vadd.f32 %v790_v31, %v750_v48 }
 0x119   :  { %531 = vst [vmem:[#allocation2 + $0x120] sm:$0xff] %v483_v41  ;;  %v749_v41 = vmul.f32 %v1352_v37, %v1352_v37  ;;  %v820_v34 = vadd.f32 %v819_v56, %v751_v49 }
 0x11a   :  { %v848_v62 = vadd.f32 %v847_v30, %v748_v38 }
 0x11b   :  { %v877_v55 = vadd.f32 %v876_v50, %v749_v41 }
 0x11c   :  { %v1362_v42 = vpop.f32.mrf.mxu2 }
 0x11d   :  { %v1364_v43 = vpop.f32.mrf.mxu3  ;;  %v1368_v45 = vpop.f32.mrf.mxu0  ;;  %v752_v54 = vmul.f32 %v1362_v42, %v1362_v42 }
 0x11e   :  { %v484_v44 = vpack.c.bf16 %v1364_v43, %v1362_v42  ;;  %v1370_v46 = vpop.f32.mrf.mxu1  ;;  %v753_v58 = vmul.f32 %v1364_v43, %v1364_v43  ;;  %v754_v3 = vmul.f32 %v1368_v45, %v1368_v45 }
 0x11f   :  { %v485_v47 = vpack.c.bf16 %v1370_v46, %v1368_v45  ;;  %v755_v5 = vmul.f32 %v1370_v46, %v1370_v46 }
 0x120   :  { %532 = vst [vmem:[#allocation2 + $0x128] sm:$0xff] %v484_v44  ;;  %v792_v13 = vadd.f32 %v791_v0, %v754_v3 }
 0x121   :  { %533 = vst [vmem:[#allocation2 + $0x130] sm:$0xff] %v485_v47  ;;  %v559_v47 = vadd.f32 %v558_v18, %v1344_v33  ;;  %v646_v33 = vadd.f32 %v645_v35, %v1352_v37  ;;  %v849_v37 = vadd.f32 %v848_v62, %v752_v54  ;;  %v821_v12 = vadd.f32 %v820_v34, %v755_v5 }
 0x123   :  { %v560_v61 = vadd.f32 %v559_v47, %v1356_v39  ;;  %v647_v39 = vadd.f32 %v646_v33, %v1364_v43 }
 0x124   :  { %v1375_v51 = vpop.f32.mrf.mxu2 }
 0x125   :  { %v1377_v52 = vpop.f32.mrf.mxu3  ;;  %v1382_v59 = vpop.f32.mrf.mxu0  ;;  %v561_v6 = vadd.f32 %v560_v61, %v1368_v45  ;;  %v756_v7 = vmul.f32 %v1375_v51, %v1375_v51 }
 0x126   :  { %v486_v57 = vpack.c.bf16 %v1377_v52, %v1375_v51  ;;  %v1384_v60 = vpop.f32.mrf.mxu1  ;;  %v757_v8 = vmul.f32 %v1377_v52, %v1377_v52  ;;  %v758_v9 = vmul.f32 %v1382_v59, %v1382_v59  ;;  %v648_v15 = vadd.f32 %v647_v39, %v1377_v52 }
 0x127   :  { %v487_v63 = vpack.c.bf16 %v1384_v60, %v1382_v59  ;;  %v759_v43 = vmul.f32 %v1384_v60, %v1384_v60  ;;  %v562_v18 = vadd.f32 %v561_v6, %v1382_v59  ;;  %v850_v21 = vadd.f32 %v849_v37, %v756_v7 }
 0x128   :  { %534 = vst [vmem:[#allocation2 + $0x138] sm:$0xff] %v486_v57  ;;  %v617_v57 = vadd.f32 %v616_v26, %v1350_v36  ;;  %v793_v23 = vadd.f32 %v792_v13, %v758_v9 }
 0x129   :  { %535 = vst [vmem:[#allocation2 + $0x140] sm:$0xff] %v487_v63  ;;  %v589_v63 = vadd.f32 %v588_v53, %v1358_v40  ;;  %v822_v25 = vadd.f32 %v821_v12, %v759_v43 }
 0x12a   :  { %v618_v36 = vadd.f32 %v617_v57, %v1362_v42  ;;  %v878_v42 = vadd.f32 %v877_v55, %v753_v58 }
 0x12b   :  { %v590_v11 = vadd.f32 %v589_v63, %v1370_v46 }
 0x12c   :  { %v1416_v17 = vpop.f32.mrf.mxu2  ;;  %v619_v14 = vadd.f32 %v618_v36, %v1375_v51  ;;  %v879_v22 = vadd.f32 %v878_v42, %v757_v8 }
 0x12d   :  { %v1418_v24 = vpop.f32.mrf.mxu3  ;;  %v232_v29 = vpop.f32.mrf.mxu0  ;;  %v760_v19 = vmul.f32 %v1416_v17, %v1416_v17  ;;  %v591_v16 = vadd.f32 %v590_v11, %v1384_v60 }
 0x12e   :  { %v488_v28 = vpack.c.bf16 %v1418_v24, %v1416_v17  ;;  %v1425_v32 = vpop.f32.mrf.mxu1  ;;  %v762_v20 = vmul.f32 %v232_v29, %v232_v29  ;;  %v620_v51 = vadd.f32 %v619_v14, %v1416_v17  ;;  %v563_v52 = vadd.f32 %v562_v18, %v232_v29 }
 0x12f   :  { %v489_v44 = vpack.c.bf16 %v1425_v32, %v232_v29  ;;  %v763_v46 = vmul.f32 %v1425_v32, %v1425_v32  ;;  %v649_v59 = vadd.f32 %v648_v15, %v1418_v24  ;;  %v761_v27 = vmul.f32 %v1418_v24, %v1418_v24 }
 0x130   :  { %536 = vst [vmem:[#allocation2 + $0x148] sm:$0xff] %v488_v28  ;;  %v592_v28 = vadd.f32 %v591_v16, %v1425_v32  ;;  %v851_v38 = vadd.f32 %v850_v21, %v760_v19  ;;  %v794_v41 = vadd.f32 %v793_v23, %v762_v20 }
 0x131   :  { %537 = vst [vmem:[#allocation2 + $0x150] sm:$0xff] %v489_v44  ;;  %v823_v44 = vadd.f32 %v822_v25, %v763_v46  ;;  %v880_v24 = vadd.f32 %v879_v22, %v761_v27 }
 0x134   :  { %v370_v1 = vpop.f32.mrf.mxu2 }
 0x135   :  { %v439_v40 = vpop.f32.mrf.mxu3  ;;  %v235_v10 = vpop.f32.mrf.mxu0  ;;  %v764_v60 = vmul.f32 %v370_v1, %v370_v1  ;;  %v621_v0 = vadd.f32 %v620_v51, %v370_v1 }
 0x136   :  { %v490_v4 = vpack.c.bf16 %v439_v40, %v370_v1  ;;  %v304_v2 = vpop.f32.mrf.mxu1  ;;  %v766_v26 = vmul.f32 %v235_v10, %v235_v10  ;;  %v564_v30 = vadd.f32 %v563_v52, %v235_v10  ;;  %v765_v49 = vmul.f32 %v439_v40, %v439_v40 }
 0x137   :  { %v491_v45 = vpack.c.bf16 %v304_v2, %v235_v10  ;;  %v767_v35 = vmul.f32 %v304_v2, %v304_v2  ;;  %v593_v50 = vadd.f32 %v592_v28, %v304_v2  ;;  %v650_v34 = vadd.f32 %v649_v59, %v439_v40 }
 0x138   :  { %538 = vst [vmem:[#allocation2 + $0x158] sm:$0xff] %v490_v4  ;;  %v795_v53 = vadd.f32 %v794_v41, %v766_v26  ;;  %v852_v36 = vadd.f32 %v851_v38, %v764_v60  ;;  %v881_v37 = vadd.f32 %v880_v24, %v765_v49 }
 0x139   :  { %539 = vst [vmem:[#allocation2 + $0x160] sm:$0xff] %v491_v45  ;;  %v824_v33 = vadd.f32 %v823_v44, %v767_v35 }
 0x13c   :  { %v373_v47 = vpop.f32.mrf.mxu2 }
 0x13d   :  { %v442_v48 = vpop.f32.mrf.mxu3  ;;  %v237_v29 = vpop.f32.mrf.mxu0  ;;  %v768_v62 = vmul.f32 %v373_v47, %v373_v47  ;;  %v622_v7 = vadd.f32 %v621_v0, %v373_v47 }
 0x13e   :  { %v492_v17 = vpack.c.bf16 %v442_v48, %v373_v47  ;;  %v306_v31 = vpop.f32.mrf.mxu1  ;;  %v565_v54 = vadd.f32 %v564_v30, %v237_v29  ;;  %v770_v56 = vmul.f32 %v237_v29, %v237_v29  ;;  %v769_v55 = vmul.f32 %v442_v48, %v442_v48 }
 0x13f   :  { %v493_v57 = vpack.c.bf16 %v306_v31, %v237_v29  ;;  %v594_v32 = vadd.f32 %v593_v50, %v306_v31  ;;  %v771_v61 = vmul.f32 %v306_v31, %v306_v31  ;;  %v651_v8 = vadd.f32 %v650_v34, %v442_v48 }
 0x140   :  { %540 = vst [vmem:[#allocation2 + $0x168] sm:$0xff] %v492_v17  ;;  %v566_v63 = vrot.slane %v565_v54, 4  ;;  %v796_v58 = vadd.f32 %v795_v53, %v770_v56  ;;  %v853_v1 = vadd.f32 %v852_v36, %v768_v62  ;;  %v882_v40 = vadd.f32 %v881_v37, %v769_v55 }
 0x141   :  { %541 = vst [vmem:[#allocation2 + $0x170] sm:$0xff] %v493_v57  ;;  %v595_v3 = vrot.slane %v594_v32, 4  ;;  %v825_v5 = vadd.f32 %v824_v33, %v771_v61 }
 0x142   :  { %v567_v39 = vadd.f32 %v566_v63, %v565_v54  ;;  %v797_v6 = vrot.slane %v796_v58, 4 }
 0x143   :  { %v596_v9 = vadd.f32 %v595_v3, %v594_v32  ;;  %v826_v4 = vrot.slane %v825_v5, 4 }
 0x144   :  { %v568_v10 = vrot.slane %v567_v39, 2  ;;  %v798_v2 = vadd.f32 %v797_v6, %v796_v58  ;;  %v375_v42 = vpop.f32.mrf.mxu2  ;;  %v673_v58 = vlaneseq }
 0x145   :  { %v444_v11 = vpop.f32.mrf.mxu3  ;;  %v597_v43 = vrot.slane %v596_v9, 2  ;;  %v827_v45 = vadd.f32 %v826_v4, %v825_v5  ;;  %v623_v13 = vadd.f32 %v622_v7, %v375_v42  ;;  %v772_v12 = vmul.f32 %v375_v42, %v375_v42 }
 0x146   :  { %v569_v14 = vadd.f32 %v568_v10, %v567_v39  ;;  %v799_v15 = vrot.slane %v798_v2, 2  ;;  %v494_v18 = vpack.c.bf16 %v444_v11, %v375_v42  ;;  %v652_v19 = vadd.f32 %v651_v8, %v444_v11 }
 0x147   :  { %v598_v20 = vadd.f32 %v597_v43, %v596_v9  ;;  %v828_v46 = vrot.slane %v827_v45, 2  ;;  %v624_v21 = vrot.slane %v623_v13, 4  ;;  %v854_v22 = vadd.f32 %v853_v1, %v772_v12 }
 0x148   :  { %v570_v23 = vrot.slane %v569_v14, 1  ;;  %v800_v16 = vadd.f32 %v799_v15, %v798_v2  ;;  %542 = vst [vmem:[#allocation2 + $0x178] sm:$0xff] %v494_v18  ;;  %v653_v25 = vrot.slane %v652_v19, 4  ;;  %v773_v51 = vmul.f32 %v444_v11, %v444_v11 }
 0x149   :  { %v599_v52 = vrot.slane %v598_v20, 1  ;;  %v829_v26 = vadd.f32 %v828_v46, %v827_v45  ;;  %v625_v59 = vadd.f32 %v624_v21, %v623_v13  ;;  %v855_v27 = vrot.slane %v854_v22, 4  ;;  %914 = dma.vmem_to_hbm [thread:$0]  %s907_s28, 6144, %s909_s5, [#allocation3], %s1161_s2, %s1161_s2, %s1162_s6  }
 0x14a   :  { %v801_v28 = vrot.slane %v800_v16, 1  ;;  %v654_v35 = vadd.f32 %v653_v25, %v652_v19  ;;  %v883_v38 = vadd.f32 %v882_v40, %v773_v51  ;;  %v571_v48 = vadd.f32 %v570_v23, %v569_v14 }
 0x14b   :  { %v600_v41 = vadd.f32 %v599_v52, %v598_v20  ;;  %v830_v44 = vrot.slane %v829_v26, 1  ;;  %v626_v30 = vrot.slane %v625_v59, 2  ;;  %v856_v47 = vadd.f32 %v855_v27, %v854_v22 }
 0x14c   :  { %v655_v60 = vrot.slane %v654_v35, 2  ;;  %v884_v49 = vrot.slane %v883_v38, 4  ;;  %v802_v53 = vadd.f32 %v801_v28, %v800_v16  ;;  %vm1487_vm5 = vcmp.lt.s32.totalorder %v673_v58, 512 }
 0x14d   :  { %v663_v50 = vrot.slane %v600_v41, 7  ;;  %v831_v17 = vadd.f32 %v830_v44, %v829_v26  ;;  %v627_v29 = vadd.f32 %v626_v30, %v625_v59  ;;  %v857_v31 = vrot.slane %v856_v47, 2 }
 0x14e   :  { %v656_v54 = vadd.f32 %v655_v60, %v654_v35  ;;  %v885_v56 = vadd.f32 %v884_v49, %v883_v38 }
 0x14f   :  { %v894_v57 = vrot.slane %v831_v17, 7  ;;  %v628_v24 = vrot.slane %v627_v29, 1  ;;  %v858_v33 = vadd.f32 %v857_v31, %v856_v47  ;;  %v667_v32 = vsel %vm666_vm2, %v571_v48, %v663_v50 }
 0x150   :  { %v657_v61 = vrot.slane %v656_v54, 1  ;;  %v886_v62 = vrot.slane %v885_v56, 2 }
 0x151   :  { %v629_v55 = vadd.f32 %v628_v24, %v627_v29  ;;  %v859_v63 = vrot.slane %v858_v33, 1  ;;  %v897_v0 = vsel %vm666_vm2, %v802_v53, %v894_v57 }
 0x152   :  { %v658_v34 = vadd.f32 %v657_v61, %v656_v54  ;;  %v887_v3 = vadd.f32 %v886_v62, %v885_v56 }
 0x153   :  { %v664_v5 = vrot.slane %v629_v55, 6  ;;  %v860_v36 = vadd.f32 %v859_v63, %v858_v33 }
 0x154   :  { %v665_v37 = vrot.slane %v658_v34, 5  ;;  %v888_v39 = vrot.slane %v887_v3, 1 }
 0x155   :  { %v895_v7 = vrot.slane %v860_v36, 6 }
 0x156   :  { %v889_v8 = vadd.f32 %v888_v39, %v887_v3  ;;  %v669_v9 = vsel %vm668_vm3, %v664_v5, %v665_v37 }
 0x157   :  { %v671_v4 = vsel %vm670_vm4, %v667_v32, %v669_v9 }
 0x158   :  { %v896_v1 = vrot.slane %v889_v8, 5  ;;  %677 = vst.msk [vmem:[#allocation4] sm:$0xf] %vm1487_vm5, %v671_v4 }
 0x159   :  { %925 = dma.vmem_to_hbm [thread:$0]  %s921_s7, 64, %s923_s10, [#allocation5]  }
 0x15a   :  { %v898_v40 = vsel %vm668_vm3, %v895_v7, %v896_v1 }
 0x15b   :  { %v899_v10 = vsel %vm670_vm4, %v897_v0, %v898_v40 }
 0x15c   :  { %901 = vst.msk [vmem:[#allocation6] sm:$0xf] %vm1487_vm5, %v899_v10 }
 0x15d   :  { %936 = dma.vmem_to_hbm [thread:$0]  %s932_s12, 64, %s934_s3, [#allocation5]  }
 0x15e   :  { %1156 = dma.done.wait [#allocation3], 6144  }
 0x15f   :  { %1157 = vsyncadd [#allocation3], 4294961152 }
 0x160   :  { %1158 = dma.done.wait [#allocation5], 128  }
 0x161   :  { %1159 = vsyncadd [#allocation5], 4294967168 }
 0x162   :  { %949 = vsyncpa [#allocation3], 1 }
 0x163   :  { %950 = vsyncpa [#allocation5], 1 }

</bundles_post_ra>
